<compile_context>
chip_gen: v7x
topology: tpu7x:2x2x1
jax: 0.10.0
libtpu: 0.0.40
codegen_flags: <defaults>
</compile_context>

<pallas_src>
import random

import jax
import jax.numpy as jnp
from jax.experimental import pallas as pl
from jax.experimental.pallas import tpu as pltpu

HIGHEST = jax.lax.Precision.HIGHEST


# ----------------------------- helpers ------------------------------------- #

def _round_up(x, m):
    return (x + m - 1) // m * m


def _pad_gate_cols(w, H, H_pad):
    """(..., 4*H) -> (..., 4*H_pad), zero-padding each gate block separately."""
    lead = w.shape[:-1]
    w4 = w.reshape(lead + (4, H))
    w4 = jnp.pad(w4, [(0, 0)] * len(lead) + [(0, 0), (0, H_pad - H)])
    return w4.reshape(lead + (4 * H_pad,))


def make_tf_mask(T, tfr=0.5, seed=0):
    """Precomputed teacher-forcing decisions (stand-in for random.random())."""
    rng = random.Random(seed)
    flips = [1] + [1 if rng.random() < tfr else 0 for _ in range(1, T)]
    return jnp.asarray(flips, dtype=jnp.int32)


# ----------------------------- kernels ------------------------------------- #

def encoder_kernel(xemb_ref, wih_ref, whh_ref, b_ref, h_ref, c_ref):
    """Grid axis = source time (sequential). h/c are VMEM-resident outputs."""
    t = pl.program_id(0)
    H = h_ref.shape[-1]

    @pl.when(t == 0)
    def _():
        h_ref[...] = jnp.zeros_like(h_ref)
        c_ref[...] = jnp.zeros_like(c_ref)

    x = xemb_ref[0]                                            # (B, E)
    gates = (jnp.dot(x, wih_ref[...], preferred_element_type=jnp.float32)
             + jnp.dot(h_ref[...], whh_ref[...],
                       preferred_element_type=jnp.float32)
             + b_ref[...])
    i = jax.nn.sigmoid(gates[:, 0 * H:1 * H])
    f = jax.nn.sigmoid(gates[:, 1 * H:2 * H])
    g = jnp.tanh(gates[:, 2 * H:3 * H])
    o = jax.nn.sigmoid(gates[:, 3 * H:4 * H])
    c_new = f * c_ref[...] + i * g
    h_new = o * jnp.tanh(c_new)
    h_ref[...] = h_new
    c_ref[...] = c_new


def decoder_kernel(mask_ref,                        # scalar prefetch: (T,) int32
                   tgt_oh_ref, h0_ref, c0_ref,      # inputs
                   w_ref, b_ref, wfc_ref, bfc_ref,
                   out_ref,                         # (1, B, V) output block
                   xh_sc, c_sc):                    # VMEM scratch
    """Whole decoder loop in one kernel; grid axis = target time step."""
    t = pl.program_id(0)
    H = c_sc.shape[-1]
    V = out_ref.shape[-1]

    @pl.when(t == 0)
    def _():
        out_ref[...] = jnp.zeros_like(out_ref)       # outputs[0] = 0
        xh_sc[:, :V] = tgt_oh_ref[0]                 # x = one_hot(target[0])
        xh_sc[:, V:] = h0_ref[...]                   # h from encoder
        c_sc[...] = c0_ref[...]                      # c from encoder

    @pl.when(t > 0)
    def _():
        # LSTM cell: single fused dot  [one_hot(x) | h] @ [[emb @ W_ih]; [W_hh]]
        gates = jnp.dot(xh_sc[...], w_ref[...],
                        preferred_element_type=jnp.float32) + b_ref[...]
        i = jax.nn.sigmoid(gates[:, 0 * H:1 * H])
        f = jax.nn.sigmoid(gates[:, 1 * H:2 * H])
        g = jnp.tanh(gates[:, 2 * H:3 * H])
        o = jax.nn.sigmoid(gates[:, 3 * H:4 * H])
        c_new = f * c_sc[...] + i * g
        h_new = o * jnp.tanh(c_new)
        c_sc[...] = c_new

        # FC projection to vocab logits, written straight into outputs[t].
        logits = jnp.dot(h_new, wfc_ref[...],
                         preferred_element_type=jnp.float32) + bfc_ref[...]
        out_ref[...] = logits[None]

        # Next input: teacher token target[t] or greedy argmax(logits).
        iota_v = jax.lax.broadcasted_iota(jnp.int32, logits.shape, 1)
        m = jnp.max(logits, axis=-1, keepdims=True)
        idx = jnp.min(jnp.where(logits >= m, iota_v, V),
                      axis=-1, keepdims=True)         # first argmax index
        greedy_oh = (iota_v == idx).astype(jnp.float32)
        tf = (mask_ref[t] > 0).astype(jnp.float32)
        xh_sc[:, :V] = tf * tgt_oh_ref[0] + (1.0 - tf) * greedy_oh
        xh_sc[:, V:] = h_new


# ----------------------------- wrappers ------------------------------------ #

def run_encoder(src_emb, wih, whh, b):
    S, B, E = src_emb.shape
    H = whh.shape[0]
    return pl.pallas_call(
        encoder_kernel,
        out_shape=(jax.ShapeDtypeStruct((B, H), jnp.float32),
                   jax.ShapeDtypeStruct((B, H), jnp.float32)),
        grid_spec=pltpu.PrefetchScalarGridSpec(
            num_scalar_prefetch=0,
            grid=(S,),
            in_specs=[
                pl.BlockSpec((1, B, E), lambda t: (t, 0, 0)),
                pl.BlockSpec((E, 4 * H), lambda t: (0, 0)),
                pl.BlockSpec((H, 4 * H), lambda t: (0, 0)),
                pl.BlockSpec((1, 4 * H), lambda t: (0, 0)),
            ],
            out_specs=[
                pl.BlockSpec((B, H), lambda t: (0, 0)),
                pl.BlockSpec((B, H), lambda t: (0, 0)),
            ],
        ),
        compiler_params=pltpu.CompilerParams(
            dimension_semantics=("arbitrary",)),
    )(src_emb, wih, whh, b)


def run_decoder(tf_mask, tgt_onehot, h0, c0, w, b, wfc, bfc):
    T, B, V = tgt_onehot.shape
    H = h0.shape[-1]
    return pl.pallas_call(
        decoder_kernel,
        out_shape=jax.ShapeDtypeStruct((T, B, V), jnp.float32),
        grid_spec=pltpu.PrefetchScalarGridSpec(
            num_scalar_prefetch=1,
            grid=(T,),
            in_specs=[
                pl.BlockSpec((1, B, V), lambda t, m: (t, 0, 0)),
                pl.BlockSpec((B, H), lambda t, m: (0, 0)),
                pl.BlockSpec((B, H), lambda t, m: (0, 0)),
                pl.BlockSpec((V + H, 4 * H), lambda t, m: (0, 0)),
                pl.BlockSpec((1, 4 * H), lambda t, m: (0, 0)),
                pl.BlockSpec((H, V), lambda t, m: (0, 0)),
                pl.BlockSpec((1, V), lambda t, m: (0, 0)),
            ],
            out_specs=pl.BlockSpec((1, B, V), lambda t, m: (t, 0, 0)),
            scratch_shapes=[pltpu.VMEM((B, V + H), jnp.float32),
                            pltpu.VMEM((B, H), jnp.float32)],
        ),
        compiler_params=pltpu.CompilerParams(
            dimension_semantics=("arbitrary",)),
    )(tf_mask, tgt_onehot, h0, c0, w, b, wfc, bfc)


def seq2seq_forward(params, source, target, tfr=0.5, tf_seed=0, tf_mask=None):
    """Mirrors Seq2Seq.forward: outputs[0] == 0; decoder loop over i=1..T-1."""
    T, B = target.shape
    H = params["enc_whh"].shape[0]
    E = params["enc_emb"].shape[-1]
    V = params["dec_bfc"].shape[-1]

    if tf_mask is None:
        # TODO(synk): PyTorch draws random.random() at every forward call; here
        # the per-step coin flips are precomputed host-side (deterministic seed)
        # so the whole decoder loop can run inside a single kernel.
        tf_mask = make_tf_mask(T, tfr, tf_seed)

    B_pad = _round_up(B, 8)
    H_pad = _round_up(H, 128)
    V_pad = _round_up(V, 128)
    E_pad = _round_up(E, 128)

    # ---------------- encoder ----------------
    src_emb = jnp.take(params["enc_emb"], source, axis=0)           # (S, B, E)
    src_emb = jnp.pad(src_emb, ((0, 0), (0, B_pad - B), (0, E_pad - E)))
    enc_wih = _pad_gate_cols(
        jnp.pad(params["enc_wih"], ((0, E_pad - E), (0, 0))), H, H_pad)
    enc_whh = _pad_gate_cols(
        jnp.pad(params["enc_whh"], ((0, H_pad - H), (0, 0))), H, H_pad)
    enc_b = _pad_gate_cols(params["enc_b"], H, H_pad)
    h0, c0 = run_encoder(src_emb, enc_wih, enc_whh, enc_b)          # (B_pad, H_pad)

    # ---------------- decoder (single fused kernel over all T steps) --------
    emb_wih = jnp.dot(params["dec_emb"], params["dec_wih"], precision=HIGHEST)
    emb_wih = _pad_gate_cols(
        jnp.pad(emb_wih, ((0, V_pad - V), (0, 0))), H, H_pad)       # (V_pad, 4H_pad)
    dec_whh = _pad_gate_cols(
        jnp.pad(params["dec_whh"], ((0, H_pad - H), (0, 0))), H, H_pad)
    w_dec = jnp.concatenate([emb_wih, dec_whh], axis=0)             # (V_pad+H_pad, 4H_pad)
    b_dec = _pad_gate_cols(params["dec_b"], H, H_pad)
    wfc = jnp.pad(params["dec_wfc"], ((0, H_pad - H), (0, V_pad - V)))
    bfc = jnp.pad(params["dec_bfc"], ((0, 0), (0, V_pad - V)))
    # Padded vocab columns get a very negative bias so greedy argmax ignores them.
    bfc = jnp.where(jnp.arange(V_pad)[None, :] < V, bfc, -1e9)

    target_p = jnp.pad(target, ((0, 0), (0, B_pad - B)))
    tgt_onehot = jax.nn.one_hot(target_p, V_pad, dtype=jnp.float32)  # (T,B_pad,V_pad)

    out = run_decoder(tf_mask, tgt_onehot, h0, c0, w_dec, b_dec, wfc, bfc)
    return out[:, :B, :V]                                            # (T, B, V)


# ----------------------------- reference ----------------------------------- #

def _cell_ref(x, h, c, wih, whh, b, H):
    gates = (jnp.dot(x, wih, precision=HIGHEST)
             + jnp.dot(h, whh, precision=HIGHEST) + b)
    i = jax.nn.sigmoid(gates[:, 0 * H:1 * H])
    f = jax.nn.sigmoid(gates[:, 1 * H:2 * H])
    g = jnp.tanh(gates[:, 2 * H:3 * H])
    o = jax.nn.sigmoid(gates[:, 3 * H:4 * H])
    c = f * c + i * g
    return o * jnp.tanh(c), c


def seq2seq_reference(params, source, target, tf_mask):
    """Pure-JAX mirror of the PyTorch module (unpadded), for correctness check."""
    T, B = target.shape
    H = params["enc_whh"].shape[0]
    V = params["dec_bfc"].shape[-1]
    h = jnp.zeros((B, H), jnp.float32)
    c = jnp.zeros((B, H), jnp.float32)
    src_emb = jnp.take(params["enc_emb"], source, axis=0)
    for t in range(source.shape[0]):
        h, c = _cell_ref(src_emb[t], h, c, params["enc_wih"],
                         params["enc_whh"], params["enc_b"], H)
    outputs = [jnp.zeros((B, V), jnp.float32)]
    x = target[0]
    for i in range(1, T):
        x_emb = jnp.take(params["dec_emb"], x, axis=0)
        h, c = _cell_ref(x_emb, h, c, params["dec_wih"],
                         params["dec_whh"], params["dec_b"], H)
        logits = jnp.dot(h, params["dec_wfc"], precision=HIGHEST) + params["dec_bfc"]
        outputs.append(logits)
        best = jnp.argmax(logits, axis=1).astype(target.dtype)
        x = jnp.where(tf_mask[i] > 0, target[i], best)
    return jnp.stack(outputs, axis=0)


# ----------------------------- setup --------------------------------------- #

def init_params(key, src_vocab, tgt_vocab, emb, hidden):
    ks = jax.random.split(key, 10)
    s = 1.0 / jnp.sqrt(hidden)
    u = lambda k, shape: jax.random.uniform(k, shape, jnp.float32, -s, s)
    return {
        "enc_emb": jax.random.normal(ks[0], (src_vocab, emb), jnp.float32) * 0.1,
        "enc_wih": u(ks[1], (emb, 4 * hidden)),
        "enc_whh": u(ks[2], (hidden, 4 * hidden)),
        "enc_b":   u(ks[3], (1, 4 * hidden)),
        "dec_emb": jax.random.normal(ks[4], (tgt_vocab, emb), jnp.float32) * 0.1,
        "dec_wih": u(ks[5], (emb, 4 * hidden)),
        "dec_whh": u(ks[6], (hidden, 4 * hidden)),
        "dec_b":   u(ks[7], (1, 4 * hidden)),
        "dec_wfc": u(ks[8], (hidden, tgt_vocab)),
        "dec_bfc": u(ks[9], (1, tgt_vocab)),
    }


if __name__ == "__main__":
    SRC_VOCAB, TGT_VOCAB = 24, 16
    EMB, HIDDEN = 16, 32
    SRC_LEN, TGT_LEN, BATCH = 7, 8, 4

    key = jax.random.PRNGKey(0)
    kp, ks, kt = jax.random.split(key, 3)
    params = init_params(kp, SRC_VOCAB, TGT_VOCAB, EMB, HIDDEN)

    source = jax.random.randint(ks, (SRC_LEN, BATCH), 0, SRC_VOCAB, jnp.int32)
    target = jax.random.randint(kt, (TGT_LEN, BATCH), 0, TGT_VOCAB, jnp.int32)

    tf_mask = make_tf_mask(TGT_LEN, tfr=0.5, seed=0)

    outputs = seq2seq_forward(params, source, target, tf_mask=tf_mask)
    outputs = jax.block_until_ready(outputs)

    assert outputs.shape == (TGT_LEN, BATCH, TGT_VOCAB)
    assert bool(jnp.all(outputs[0] == 0.0))
    assert bool(jnp.all(jnp.isfinite(outputs)))

    ref = seq2seq_reference(params, source, target, tf_mask)
    max_err = float(jnp.max(jnp.abs(outputs - ref)))
    assert bool(jnp.allclose(outputs, ref, rtol=5e-3, atol=5e-3)), max_err

    print("KERNEL_OK")
</pallas_src>

<mosaic_0001>
module attributes {stable_mosaic.version = 11 : i64} {
  func.func @encoder_kernel(%arg0: i32, %arg1: memref<1x8x128xf32, #tpu.memory_space<vmem>>, %arg2: memref<128x512xf32, #tpu.memory_space<vmem>>, %arg3: memref<128x512xf32, #tpu.memory_space<vmem>>, %arg4: memref<1x512xf32, #tpu.memory_space<vmem>>, %arg5: memref<8x128xf32, #tpu.memory_space<vmem>>, %arg6: memref<8x128xf32, #tpu.memory_space<vmem>>) attributes {dimension_semantics = [#tpu.dimension_semantics<arbitrary>], iteration_bounds = array<i64: 7>, scalar_prefetch = 0 : i64, scratch_operands = 0 : i64, tpu.core_type = #tpu.core_type<tc>, window_params = [{transform_indices = @transform_0, window_bounds = array<i64: 1, 8, 128>}, {pipeline_mode = #tpu.pipeline_mode<synchronous>, transform_indices = @transform_1, window_bounds = array<i64: 128, 512>}, {pipeline_mode = #tpu.pipeline_mode<synchronous>, transform_indices = @transform_2, window_bounds = array<i64: 128, 512>}, {pipeline_mode = #tpu.pipeline_mode<synchronous>, transform_indices = @transform_3, window_bounds = array<i64: 1, 512>}, {pipeline_mode = #tpu.pipeline_mode<synchronous>, transform_indices = @transform_4, window_bounds = array<i64: 8, 128>}, {pipeline_mode = #tpu.pipeline_mode<synchronous>, transform_indices = @transform_5, window_bounds = array<i64: 8, 128>}]} {
    %c0_i32 = arith.constant 0 : i32
    %0 = arith.cmpi eq, %arg0, %c0_i32 : i32
    %1 = arith.extui %0 : i1 to i32
    %c0_i32_0 = arith.constant 0 : i32
    %2 = arith.cmpi ne, %1, %c0_i32_0 : i32
    scf.if %2 {
      %cst_21 = arith.constant 0.000000e+00 : f32
      %42 = vector.broadcast %cst_21 : f32 to vector<8x128xf32>
      %c0_22 = arith.constant 0 : index
      %c0_23 = arith.constant 0 : index
      %43 = vector.load %arg5[%c0_22, %c0_23] : memref<8x128xf32, #tpu.memory_space<vmem>>, vector<8x128xf32>
      tpu.vector_store %arg5[%c0_22, %c0_23], %42 {strides = array<i32>} : memref<8x128xf32, #tpu.memory_space<vmem>>, vector<8x128xf32>,
      %cst_24 = arith.constant 0.000000e+00 : f32
      %44 = vector.broadcast %cst_24 : f32 to vector<8x128xf32>
      %c0_25 = arith.constant 0 : index
      %c0_26 = arith.constant 0 : index
      %45 = vector.load %arg6[%c0_25, %c0_26] : memref<8x128xf32, #tpu.memory_space<vmem>>, vector<8x128xf32>
      tpu.vector_store %arg6[%c0_25, %c0_26], %44 {strides = array<i32>} : memref<8x128xf32, #tpu.memory_space<vmem>>, vector<8x128xf32>,
    } else {
    }
    %c0 = arith.constant 0 : index
    %c0_1 = arith.constant 0 : index
    %c0_2 = arith.constant 0 : index
    %3 = vector.load %arg1[%c0, %c0_1, %c0_2] : memref<1x8x128xf32, #tpu.memory_space<vmem>>, vector<1x8x128xf32>
    %4 = vector.shape_cast %3 : vector<1x8x128xf32> to vector<8x128xf32>
    %c0_3 = arith.constant 0 : index
    %c0_4 = arith.constant 0 : index
    %5 = vector.load %arg2[%c0_3, %c0_4] : memref<128x512xf32, #tpu.memory_space<vmem>>, vector<128x512xf32>
    %cst = arith.constant dense<0.000000e+00> : vector<8x512xf32>
    %6 = tpu.matmul %4, %5, %cst {dimension_numbers = #tpu.dot_dimension_numbers<[1], [0], [0], [1], [0, 0, 1, 1], [], []>} : vector<8x128xf32>, vector<128x512xf32>, vector<8x512xf32> -> vector<8x512xf32>
    %c0_5 = arith.constant 0 : index
    %c0_6 = arith.constant 0 : index
    %7 = vector.load %arg5[%c0_5, %c0_6] : memref<8x128xf32, #tpu.memory_space<vmem>>, vector<8x128xf32>
    %c0_7 = arith.constant 0 : index
    %c0_8 = arith.constant 0 : index
    %8 = vector.load %arg3[%c0_7, %c0_8] : memref<128x512xf32, #tpu.memory_space<vmem>>, vector<128x512xf32>
    %cst_9 = arith.constant dense<0.000000e+00> : vector<8x512xf32>
    %9 = tpu.matmul %7, %8, %cst_9 {dimension_numbers = #tpu.dot_dimension_numbers<[1], [0], [0], [1], [0, 0, 1, 1], [], []>} : vector<8x128xf32>, vector<128x512xf32>, vector<8x512xf32> -> vector<8x512xf32>
    %10 = arith.addf %6, %9 : vector<8x512xf32>
    %c0_10 = arith.constant 0 : index
    %c0_11 = arith.constant 0 : index
    %11 = vector.load %arg4[%c0_10, %c0_11] : memref<1x512xf32, #tpu.memory_space<vmem>>, vector<1x512xf32>
    %12 = vector.broadcast %11 : vector<1x512xf32> to vector<8x512xf32>
    %13 = arith.addf %10, %12 : vector<8x512xf32>
    %14 = vector.extract_strided_slice %13 {offsets = [0, 0], sizes = [8, 128], strides = [1, 1]} : vector<8x512xf32> to vector<8x128xf32>
    %15 = arith.negf %14 : vector<8x128xf32>
    %16 = math.exp %15 : vector<8x128xf32>
    %cst_12 = arith.constant 1.000000e+00 : f32
    %17 = vector.broadcast %cst_12 : f32 to vector<8x128xf32>
    %18 = arith.addf %17, %16 : vector<8x128xf32>
    %19 = arith.divf %17, %18 : vector<8x128xf32>
    %20 = vector.extract_strided_slice %13 {offsets = [0, 128], sizes = [8, 128], strides = [1, 1]} : vector<8x512xf32> to vector<8x128xf32>
    %21 = arith.negf %20 : vector<8x128xf32>
    %22 = math.exp %21 : vector<8x128xf32>
    %cst_13 = arith.constant 1.000000e+00 : f32
    %23 = vector.broadcast %cst_13 : f32 to vector<8x128xf32>
    %24 = arith.addf %23, %22 : vector<8x128xf32>
    %25 = arith.divf %23, %24 : vector<8x128xf32>
    %26 = vector.extract_strided_slice %13 {offsets = [0, 256], sizes = [8, 128], strides = [1, 1]} : vector<8x512xf32> to vector<8x128xf32>
    %27 = math.tanh %26 : vector<8x128xf32>
    %28 = vector.extract_strided_slice %13 {offsets = [0, 384], sizes = [8, 128], strides = [1, 1]} : vector<8x512xf32> to vector<8x128xf32>
    %29 = arith.negf %28 : vector<8x128xf32>
    %30 = math.exp %29 : vector<8x128xf32>
    %cst_14 = arith.constant 1.000000e+00 : f32
    %31 = vector.broadcast %cst_14 : f32 to vector<8x128xf32>
    %32 = arith.addf %31, %30 : vector<8x128xf32>
    %33 = arith.divf %31, %32 : vector<8x128xf32>
    %c0_15 = arith.constant 0 : index
    %c0_16 = arith.constant 0 : index
    %34 = vector.load %arg6[%c0_15, %c0_16] : memref<8x128xf32, #tpu.memory_space<vmem>>, vector<8x128xf32>
    %35 = arith.mulf %25, %34 : vector<8x128xf32>
    %36 = arith.mulf %19, %27 : vector<8x128xf32>
    %37 = arith.addf %35, %36 : vector<8x128xf32>
    %38 = math.tanh %37 : vector<8x128xf32>
    %39 = arith.mulf %33, %38 : vector<8x128xf32>
    %c0_17 = arith.constant 0 : index
    %c0_18 = arith.constant 0 : index
    %40 = vector.load %arg5[%c0_17, %c0_18] : memref<8x128xf32, #tpu.memory_space<vmem>>, vector<8x128xf32>
    tpu.vector_store %arg5[%c0_17, %c0_18], %39 {strides = array<i32>} : memref<8x128xf32, #tpu.memory_space<vmem>>, vector<8x128xf32>,
    %c0_19 = arith.constant 0 : index
    %c0_20 = arith.constant 0 : index
    %41 = vector.load %arg6[%c0_19, %c0_20] : memref<8x128xf32, #tpu.memory_space<vmem>>, vector<8x128xf32>
    tpu.vector_store %arg6[%c0_19, %c0_20], %37 {strides = array<i32>} : memref<8x128xf32, #tpu.memory_space<vmem>>, vector<8x128xf32>,
    return
  }
  func.func @transform_0(%arg0: i32) -> (i32, i32, i32) {
    %c0_i32 = arith.constant 0 : i32
    %c0_i32_0 = arith.constant 0 : i32
    %c0_i32_1 = arith.constant 0 : i32
    return %arg0, %c0_i32, %c0_i32_0 : i32, i32, i32
  }
  func.func @transform_1(%arg0: i32) -> (i32, i32) {
    %c0_i32 = arith.constant 0 : i32
    %c0_i32_0 = arith.constant 0 : i32
    %c0_i32_1 = arith.constant 0 : i32
    return %c0_i32, %c0_i32_0 : i32, i32
  }
  func.func @transform_2(%arg0: i32) -> (i32, i32) {
    %c0_i32 = arith.constant 0 : i32
    %c0_i32_0 = arith.constant 0 : i32
    %c0_i32_1 = arith.constant 0 : i32
    return %c0_i32, %c0_i32_0 : i32, i32
  }
  func.func @transform_3(%arg0: i32) -> (i32, i32) {
    %c0_i32 = arith.constant 0 : i32
    %c0_i32_0 = arith.constant 0 : i32
    %c0_i32_1 = arith.constant 0 : i32
    return %c0_i32, %c0_i32_0 : i32, i32
  }
  func.func @transform_4(%arg0: i32) -> (i32, i32) {
    %c0_i32 = arith.constant 0 : i32
    %c0_i32_0 = arith.constant 0 : i32
    %c0_i32_1 = arith.constant 0 : i32
    return %c0_i32, %c0_i32_0 : i32, i32
  }
  func.func @transform_5(%arg0: i32) -> (i32, i32) {
    %c0_i32 = arith.constant 0 : i32
    %c0_i32_0 = arith.constant 0 : i32
    %c0_i32_1 = arith.constant 0 : i32
    return %c0_i32, %c0_i32_0 : i32, i32
  }
}

</mosaic_0001>

<bundles_post_ra>
// kernel: tpu_custom_call.1
= control target key start
LH: loop header
LB: loop body
LE: loop exit
PB: predicated region body
PF: predicated region fallthrough
CT: control target
= control target key end

     0   :  { %11 = vsyncpa [#allocation3], 0  ;;  %s1526_s0 = inlined_call_operand.hbm [shape: f32[7,8,128], index: 0, kind: input, shape index: {}]   ;;  %s1527_s1 = inlined_call_operand.hbm [shape: f32[128,512], index: 1, kind: input, shape index: {}]   ;;  %s1528_s2 = inlined_call_operand.hbm [shape: f32[128,512], index: 2, kind: input, shape index: {}]   ;;  %s1529_s3 = inlined_call_operand.vmem [shape: f32[1,512], index: 3, kind: input, shape index: {}]   ;;  %s1530_s4 = inlined_call_operand.hbm [shape: f32[8,128], index: 4, kind: output, shape index: {0}]   ;;  %s1531_s5 = inlined_call_operand.hbm [shape: f32[8,128], index: 5, kind: output, shape index: {1}]  }
   0x1   :  { %13 = vsyncpa [#allocation3 + $0x1], 0 }
   0x2   :  { %14 = vsyncpa [#allocation6], 0 }
   0x3   :  { %15 = vsyncpa [#allocation4], 0 }
   0x4   :  { %16 = vsyncpa [#allocation10], 0  ;;  %s1299_s18 = smov 0   ;;  %s1301_s19 = smov 0  }
   0x5   :  { %s1303_s20 = smov 0   ;;  %s1305_s21 = smov 0  }
   0x6 LB: > { %s1318_s22 = sadd.s32 4294967295, %s1258_s21   ;;  %p42_p0 = scmp.ne.s32.totalorder %s1250_s19, %s1246_s18  ;;  %s1258_s21 = sphi %s1305_s21, %s1547_s21   ;;  %s1254_s20 = sphi %s1303_s20, %s1546_s20   ;;  %s1250_s19 = sphi %s1301_s19, %s1545_s19   ;;  %s1246_s18 = sphi %s1299_s18, %s1544_s18  }
   0x7   : > { %p1532_p1 = scmp.eq.s32.totalorder %s1318_s22, 0  ;;  %p828_p2 = scmp.ge.s32.totalorder %s1258_s21, 1 }
   0x8   : > { %p158_p3 = scmp.lt.s32.totalorder %s1258_s21, 8  ;;  %s1260_s25 = smov [#allocation5]  }
   0x9   : > { %p1327_p5 = por %p1532_p1, %p42_p0  ;;  %s170_s26 = sshll.u32 %s1260_s25, 4  ;;  %s171_s26 = int_to_ptr.vmem [resolvable:$true] %s170_s26 }
   0xa   : > { %p1331_p6 = pnand %p828_p2, %p158_p3  ;;  %s1261_s28 = smov [#allocation7]  }
   0xb   : > { %s1535_s23 = scalar_select %p1327_p5, 1, 0 }
   0xc   : > { %s1536_s24 = scalar_select %p1331_p6, 1, 0 }
   0xd   : > { %p998_p7 = pneg %p1331_p6  ;;  %s183_s29 = sshll.u32 %s1261_s28, 4  ;;  %s1343_s29 = int_to_ptr.vmem [resolvable:$true] %s183_s29 }
   0xe   : > { %s1074_s7 = scalar_lea.hbm %s1527_s1, 8192 }
   0xf   : > { %p1339_p8 = pnand %p998_p7, %p1532_p1  ;;  %p1075_p9 = scmp.ne.s32.totalorder %s1527_s1, %s1074_s7 }
  0x10   : > { %p1081_p13 = scmp.lt.u32.totalorder %s1074_s7, %s1527_s1 }
  0x11   : > { %p1076_p10 = pneg %p1339_p8 }
  0x13   : > { %p1077_p11 = pnand %p1076_p10, %p1075_p9 }
  0x15   : > { %p1078_p12 = pneg %p1077_p11 }
  0x17   : > { %p1083_p0 = pnand %p1081_p13, %p1078_p12 }
  0x19   : > { %1086 = shalt.err (!%p1083_p0)
}
  0x1a   : > { %s1087_s12 = scalar_lea.vmem %s171_s26, 8192  ;;  %p1095_p4 = scmp.lt.s32.totalorder %s171_s26, %s171_s26 }
  0x1b   : > { %p1088_p2 = scmp.ne.s32.totalorder %s171_s26, %s1087_s12  ;;  %p1096_p1 = scmp.lt.s32.totalorder %s1087_s12, %s1087_s12 }
  0x1d   : > { %p1090_p3 = pnand %p1088_p2, %p1076_p10  ;;  %p1097_p5 = por %p1096_p1, %p1095_p4 }
  0x1f   : > { %p1091_p7 = pneg %p1090_p3 }
  0x21   : > { %p1098_p6 = pnand %p1097_p5, %p1091_p7 }
  0x23   : > { %1101 = shalt.err (!%p1098_p6)
}
  0x24   : > { %s1262_s13 = smov 512   ;;  %s1263_s14 = smov 32  }
  0x25   : > { %1001 = dma.hbm_to_vmem [thread:$0]  (!%p1339_p8), %s1527_s1, 8192, %s171_s26, [#allocation6], %s1262_s13, %s1262_s13, %s1263_s14  }
  0x26   : > { %s1102_s25 = scalar_lea.hbm %s1528_s2, 8192 }
  0x27   : > { %p1103_p9 = scmp.ne.s32.totalorder %s1528_s2, %s1102_s25  ;;  %p1109_p5 = scmp.lt.u32.totalorder %s1102_s25, %s1528_s2 }
  0x29   : > { %p1105_p1 = pnand %p1103_p9, %p1076_p10 }
  0x2b   : > { %p1106_p4 = pneg %p1105_p1 }
  0x2d   : > { %p1111_p6 = pnand %p1109_p5, %p1106_p4 }
  0x2f   : > { %1114 = shalt.err (!%p1111_p6)
}
  0x30   : > { %s1115_s26 = scalar_lea.vmem %s1343_s29, 8192  ;;  %p1123_p0 = scmp.lt.s32.totalorder %s1343_s29, %s1343_s29 }
  0x31   : > { %p1116_p11 = scmp.ne.s32.totalorder %s1343_s29, %s1115_s26  ;;  %p1124_p2 = scmp.lt.s32.totalorder %s1115_s26, %s1115_s26 }
  0x33   : > { %p1118_p12 = pnand %p1116_p11, %p1076_p10  ;;  %p1125_p3 = por %p1124_p2, %p1123_p0 }
  0x35   : > { %p1119_p13 = pneg %p1118_p12 }
  0x37   : > { %p1126_p7 = pnand %p1125_p3, %p1119_p13 }
  0x39   : > { %1129 = shalt.err (!%p1126_p7)
}
  0x3a   : > { %1004 = dma.hbm_to_vmem [thread:$0]  (!%p1339_p8), %s1528_s2, 8192, %s1343_s29, [#allocation6], %s1262_s13, %s1262_s13, %s1263_s14  }
  0x3b   : > { %s1393_s10 = sadd.s32 1, %s1258_s21   ;;  %s29_s11 = sadd.s32 1, %s1254_s20 }
  0x3c   : > { %s26_s27 = ssub.s32 %s1258_s21, %s1393_s10  ;;  %p36_p10 = scmp.ne.s32.totalorder %s1254_s20, %s1250_s19 }
  0x3d   : > { %p27_p9 = scmp.eq.s32.totalorder %s26_s27, 0  ;;  %p37_p1 = scmp.eq.s32.totalorder %s1258_s21, 0 }
  0x3e   : > { %p1011_p4 = scmp.lt.s32.totalorder %s1258_s21, 7  ;;  %s200_s12 = sand.u32 1, %s1254_s20  }
  0x3f   : > { %s1404_s15 = scalar_select %p27_p9, %s1254_s20, %s29_s11  }
  0x40   : > { %p38_p5 = por %p37_p1, %p36_p10  ;;  %s832_s16 = sshll.u32 %s200_s12, 3 }
  0x41   : > { %s833_s17 = sshll.u32 %s1258_s21, 7  ;;  %s204_s29 = scalar_lea.vmem [#allocation2], %s832_s16 }
  0x42   : > { %s1410_s28 = scalar_lea.hbm %s1526_s0, %s833_s17  ;;  %s211_s13 = sshll.u32 %s204_s29, 4  ;;  %s1416_s13 = int_to_ptr.vmem [resolvable:$true] %s211_s13 }
  0x43   : > { %p1412_p8 = pnand %p1011_p4, %p38_p5  ;;  %s201_s21 = scalar_lea.sflag [#allocation3], %s200_s12 }
  0x44   : > { %s1130_s30 = scalar_lea.hbm %s1410_s28, 128  ;;  %s1135_s26 = scalar_lea.hbm %s1526_s0, 896 }
  0x45   : > { %p1131_p6 = scmp.ne.s32.totalorder %s1410_s28, %s1130_s30  ;;  %p1132_p11 = pneg %p1412_p8 }
  0x46   : > { %p1136_p0 = scmp.lt.u32.totalorder %s1410_s28, %s1526_s0  ;;  %p1137_p2 = scmp.lt.u32.totalorder %s1135_s26, %s1130_s30 }
  0x47   : > { %p1133_p12 = pnand %p1132_p11, %p1131_p6  ;;  %p1139_p7 = scmp.lt.u32.totalorder %s1130_s30, %s1410_s28 }
  0x48   : > { %p1138_p3 = por %p1137_p2, %p1136_p0 }
  0x49   : > { %p1134_p13 = pneg %p1133_p12 }
  0x4a   : > { %p1140_p10 = por %p1139_p7, %p1138_p3 }
  0x4c   : > { %p1141_p9 = pnand %p1140_p10, %p1134_p13 }
  0x4e   : > { %1144 = shalt.err (!%p1141_p9)
}
  0x4f   : > { %s1145_s11 = scalar_lea.vmem %s1416_s13, 128  ;;  %s1264_s27 = smov [#allocation2]  }
  0x50   : > { %p1146_p1 = scmp.ne.s32.totalorder %s1416_s13, %s1145_s11  ;;  %s1150_s12 = sshll.u32 %s1264_s27, 4  ;;  %s1151_s12 = int_to_ptr.vmem [resolvable:$false] %s1150_s12 }
  0x51   : > { %s1152_s16 = scalar_lea.vmem %s1151_s12, 256  ;;  %p1153_p6 = scmp.lt.s32.totalorder %s1416_s13, %s1151_s12 }
  0x52   : > { %p1148_p4 = pnand %p1146_p1, %p1132_p11  ;;  %p1154_p12 = scmp.lt.s32.totalorder %s1152_s16, %s1145_s11 }
  0x54   : > { %p1149_p5 = pneg %p1148_p4  ;;  %p1155_p0 = por %p1154_p12, %p1153_p6 }
  0x56   : > { %p1156_p2 = pnand %p1155_p0, %p1149_p5 }
  0x58   : > { %1159 = shalt.err (!%p1156_p2)
}
  0x59   : > { %1008 = dma.hbm_to_vmem [thread:$0]  (!%p1412_p8), %s1410_s28, 128, %s1416_s13, %s201_s21  }
  0x5a   : > { %p1539_p13 = scmp.ne.s32.totalorder %s1536_s24, 0 }
  0x5b   : > { %s222_s17 = sand.u32 (!%p1539_p13), 1, %s1250_s19   ;;  %p1540_p11 = scmp.ne.s32.totalorder (!%p1539_p13), %s1535_s23, 0 }
  0x5c   : > { %220 = sbr.rel (%p1539_p13) target bundleno = 465 (0x1d1), region = 36  ;;  %s1446_s18 = sshll.u32 (!%p1539_p13), %s222_s17, 3 }
  0x5d   : > { %s223_s25 = scalar_lea.sflag (!%p1539_p13), [#allocation3], %s222_s17  ;;  %s226_s29 = scalar_lea.vmem (!%p1539_p13), [#allocation2], %s1446_s18 }
  0x63   : > { %1229 = dma.done.wait (%p1540_p11), %s223_s25, 128  }
  0x64   : > { %1231 = vsyncadd (%p1540_p11), %s223_s25, 4294967168  ;;  %p1541_p3 = scmp.eq.s32.totalorder %s1318_s22, 0 }
  0x66   : > { %1233 = dma.done.wait (%p1541_p3), [#allocation6], 16384   ;;  %p1542_p8 = pmov %p1541_p3 }
  0x67   : > { %p1543_p7 = scmp.ne.s32.totalorder %s1318_s22, 0 }
  0x68   : > { %1235 = vsyncadd (%p1542_p8), [#allocation6], 4294950912  ;;  %v1265_v0 = vmov (!%p1543_p7), 0.0  }
  0x69   : > { %259 = sbr.rel (%p1543_p7) target bundleno = 112 (0x70), region = 52  ;;  %260 = vst [vmem:[#allocation8] sm:$0xff] (!%p1543_p7), %v1265_v0  ;;  %261 = vst [vmem:[#allocation9] sm:$0xff] (!%p1543_p7), %v1265_v0 }
  0x70 PF: > { %v329_v1 = vld [vmem:[#allocation7 + $0x8] sm:$0xff]  ;;  %v331_v3 = vld [vmem:[#allocation7 + $0x18] sm:$0xff]  ;;  %v328_v6 = vld [vmem:[#allocation7] sm:$0xff]  ;;  %v1266_v8 = vmov 0.0   ;;  %s1267_s28 = smov [#allocation9]   ;;  %p1014_p10 = scmp.eq.s32.totalorder %s1318_s22, 6 }
  0x71   : > { %v333_v2 = vld [vmem:[#allocation7 + $0x28] sm:$0xff]  ;;  %v335_v5 = vld [vmem:[#allocation7 + $0x38] sm:$0xff]  ;;  %v332_v7 = vld [vmem:[#allocation7 + $0x20] sm:$0xff]  ;;  %456 = vmatprep.mubr.f32.mxu0 %v1266_v8  ;;  %527 = vmatprep.mubr.f32.mxu1 %v1266_v8  ;;  %s747_s13 = sshll.u32 %s1267_s28, 4  ;;  %s748_s13 = int_to_ptr.vmem [resolvable:$true] %s747_s13 }
  0x72   : > { %v848_v4 = vpack.c.bf16 %v333_v2, %v329_v1  ;;  %v880_v9 = vpack.c.bf16 %v335_v5, %v331_v3  ;;  %v850_v10 = vpack.c.bf16 %v332_v7, %v328_v6  ;;  %v330_v11 = vld [vmem:[#allocation7 + $0x10] sm:$0xff]  ;;  %v337_v13 = vld [vmem:[#allocation7 + $0x48] sm:$0xff]  ;;  %v339_v16 = vld [vmem:[#allocation7 + $0x58] sm:$0xff]  ;;  %s1160_s14 = scalar_lea.vmem %s748_s13, 128  ;;  %p1167_p5 = scmp.lt.s32.totalorder %s748_s13, %s748_s13 }
  0x73   : > { %v334_v12 = vld [vmem:[#allocation7 + $0x30] sm:$0xff]  ;;  %v341_v15 = vld [vmem:[#allocation7 + $0x68] sm:$0xff]  ;;  %v343_v17 = vld [vmem:[#allocation7 + $0x78] sm:$0xff]  ;;  %p1161_p9 = scmp.ne.s32.totalorder %s748_s13, %s1160_s14  ;;  %p1168_p6 = scmp.lt.s32.totalorder %s1160_s14, %s1160_s14 }
  0x74   : > { %849 = vmatprep.subr.bf16.mxu0 %v848_v4  ;;  %v882_v14 = vpack.c.bf16 %v334_v12, %v330_v11  ;;  %881 = vmatprep.subr.bf16.mxu1 %v880_v9  ;;  %v852_v18 = vpack.c.bf16 %v341_v15, %v337_v13  ;;  %v884_v19 = vpack.c.bf16 %v343_v17, %v339_v16  ;;  %v336_v20 = vld [vmem:[#allocation7 + $0x40] sm:$0xff]  ;;  %v338_v22 = vld [vmem:[#allocation7 + $0x50] sm:$0xff]  ;;  %v345_v25 = vld [vmem:[#allocation7 + $0x88] sm:$0xff] }
  0x75   : > { %851 = vmatpush1.bf16.msra.mxu0 %v850_v10  ;;  %v340_v21 = vld [vmem:[#allocation7 + $0x60] sm:$0xff]  ;;  %v342_v24 = vld [vmem:[#allocation7 + $0x70] sm:$0xff]  ;;  %v349_v26 = vld [vmem:[#allocation7 + $0xa8] sm:$0xff]  ;;  %p1162_p1 = pnand %p1161_p9, %p1014_p10  ;;  %p1169_p12 = por %p1168_p6, %p1167_p5 }
  0x76   : > { %883 = vmatpush1.bf16.msra.mxu1 %v882_v14  ;;  %v854_v23 = vpack.c.bf16 %v340_v21, %v336_v20  ;;  %853 = vmatprep.subr.bf16.mxu0 %v852_v18  ;;  %v886_v27 = vpack.c.bf16 %v342_v24, %v338_v22  ;;  %v856_v28 = vpack.c.bf16 %v349_v26, %v345_v25  ;;  %v347_v29 = vld [vmem:[#allocation7 + $0x98] sm:$0xff]  ;;  %v344_v31 = vld [vmem:[#allocation7 + $0x80] sm:$0xff]  ;;  %v346_v34 = vld [vmem:[#allocation7 + $0x90] sm:$0xff] }
  0x77   : > { %885 = vmatprep.subr.bf16.mxu1 %v884_v19  ;;  %v351_v30 = vld [vmem:[#allocation7 + $0xb8] sm:$0xff]  ;;  %v348_v33 = vld [vmem:[#allocation7 + $0xa0] sm:$0xff]  ;;  %v350_v35 = vld [vmem:[#allocation7 + $0xb0] sm:$0xff]  ;;  %p1163_p4 = pneg %p1162_p1 }
  0x78   : > { %v888_v32 = vpack.c.bf16 %v351_v30, %v347_v29  ;;  %v858_v36 = vpack.c.bf16 %v348_v33, %v344_v31  ;;  %v353_v37 = vld [vmem:[#allocation7 + $0xc8] sm:$0xff]  ;;  %v355_v39 = vld [vmem:[#allocation7 + $0xd8] sm:$0xff]  ;;  %v890_v40 = vpack.c.bf16 %v350_v35, %v346_v34  ;;  %v352_v43 = vld [vmem:[#allocation7 + $0xc0] sm:$0xff] }
  0x79   : > { %855 = vmatpush1.bf16.msra.mxu0 %v854_v23  ;;  %v357_v38 = vld [vmem:[#allocation7 + $0xe8] sm:$0xff]  ;;  %v359_v42 = vld [vmem:[#allocation7 + $0xf8] sm:$0xff]  ;;  %v356_v44 = vld [vmem:[#allocation7 + $0xe0] sm:$0xff]  ;;  %p1170_p0 = pnand %p1169_p12, %p1163_p4 }
  0x7a   : > { %887 = vmatpush1.bf16.msra.mxu1 %v886_v27  ;;  %857 = vmatprep.subr.bf16.mxu0 %v856_v28  ;;  %v860_v41 = vpack.c.bf16 %v357_v38, %v353_v37  ;;  %v892_v45 = vpack.c.bf16 %v359_v42, %v355_v39  ;;  %v354_v46 = vld [vmem:[#allocation7 + $0xd0] sm:$0xff]  ;;  %v361_v48 = vld [vmem:[#allocation7 + $0x108] sm:$0xff]  ;;  %v363_v50 = vld [vmem:[#allocation7 + $0x118] sm:$0xff]  ;;  %v862_v52 = vpack.c.bf16 %v356_v44, %v352_v43 }
  0x7b   : > { %889 = vmatprep.subr.bf16.mxu1 %v888_v32  ;;  %v358_v47 = vld [vmem:[#allocation7 + $0xf0] sm:$0xff]  ;;  %v365_v49 = vld [vmem:[#allocation7 + $0x128] sm:$0xff]  ;;  %v367_v51 = vld [vmem:[#allocation7 + $0x138] sm:$0xff] }
  0x7c   : > { %v894_v53 = vpack.c.bf16 %v358_v47, %v354_v46  ;;  %v864_v54 = vpack.c.bf16 %v365_v49, %v361_v48  ;;  %v360_v55 = vld [vmem:[#allocation7 + $0x100] sm:$0xff]  ;;  %v362_v57 = vld [vmem:[#allocation7 + $0x110] sm:$0xff]  ;;  %v896_v58 = vpack.c.bf16 %v367_v51, %v363_v50  ;;  %v369_v60 = vld [vmem:[#allocation7 + $0x148] sm:$0xff] }
  0x7d   : > { %859 = vmatpush1.bf16.msra.mxu0 %v858_v36  ;;  %v364_v56 = vld [vmem:[#allocation7 + $0x120] sm:$0xff]  ;;  %v366_v59 = vld [vmem:[#allocation7 + $0x130] sm:$0xff]  ;;  %v373_v61 = vld [vmem:[#allocation7 + $0x168] sm:$0xff] }
  0x7e   : > { %891 = vmatpush1.bf16.msra.mxu1 %v890_v40  ;;  %861 = vmatprep.subr.bf16.mxu0 %v860_v41  ;;  %v371_v62 = vld [vmem:[#allocation7 + $0x158] sm:$0xff]  ;;  %v866_v0 = vpack.c.bf16 %v364_v56, %v360_v55  ;;  %v898_v1 = vpack.c.bf16 %v366_v59, %v362_v57  ;;  %v868_v2 = vpack.c.bf16 %v373_v61, %v369_v60  ;;  %v368_v3 = vld [vmem:[#allocation7 + $0x140] sm:$0xff]  ;;  %v370_v5 = vld [vmem:[#allocation7 + $0x150] sm:$0xff] }
  0x7f   : > { %893 = vmatprep.subr.bf16.mxu1 %v892_v45  ;;  %v375_v63 = vld [vmem:[#allocation7 + $0x178] sm:$0xff]  ;;  %v372_v4 = vld [vmem:[#allocation7 + $0x160] sm:$0xff]  ;;  %v374_v7 = vld [vmem:[#allocation7 + $0x170] sm:$0xff] }
  0x80   : > { %v900_v6 = vpack.c.bf16 %v375_v63, %v371_v62  ;;  %v377_v9 = vld [vmem:[#allocation7 + $0x188] sm:$0xff]  ;;  %v379_v11 = vld [vmem:[#allocation7 + $0x198] sm:$0xff]  ;;  %v870_v13 = vpack.c.bf16 %v372_v4, %v368_v3  ;;  %v902_v14 = vpack.c.bf16 %v374_v7, %v370_v5  ;;  %v376_v16 = vld [vmem:[#allocation7 + $0x180] sm:$0xff] }
  0x81   : > { %863 = vmatpush1.bf16.msra.mxu0 %v862_v52  ;;  %v381_v10 = vld [vmem:[#allocation7 + $0x1a8] sm:$0xff]  ;;  %v383_v12 = vld [vmem:[#allocation7 + $0x1b8] sm:$0xff]  ;;  %v380_v17 = vld [vmem:[#allocation7 + $0x1a0] sm:$0xff] }
  0x82   : > { %895 = vmatpush1.bf16.msra.mxu1 %v894_v53  ;;  %865 = vmatprep.subr.bf16.mxu0 %v864_v54  ;;  %v872_v15 = vpack.c.bf16 %v381_v10, %v377_v9  ;;  %v378_v18 = vld [vmem:[#allocation7 + $0x190] sm:$0xff]  ;;  %v904_v19 = vpack.c.bf16 %v383_v12, %v379_v11  ;;  %v385_v21 = vld [vmem:[#allocation7 + $0x1c8] sm:$0xff]  ;;  %v387_v23 = vld [vmem:[#allocation7 + $0x1d8] sm:$0xff]  ;;  %v874_v25 = vpack.c.bf16 %v380_v17, %v376_v16 }
  0x83   : > { %897 = vmatprep.subr.bf16.mxu1 %v896_v58  ;;  %v382_v20 = vld [vmem:[#allocation7 + $0x1b0] sm:$0xff]  ;;  %v389_v22 = vld [vmem:[#allocation7 + $0x1e8] sm:$0xff]  ;;  %v391_v24 = vld [vmem:[#allocation7 + $0x1f8] sm:$0xff] }
  0x84   : > { %v906_v26 = vpack.c.bf16 %v382_v20, %v378_v18  ;;  %v876_v27 = vpack.c.bf16 %v389_v22, %v385_v21  ;;  %v384_v28 = vld [vmem:[#allocation7 + $0x1c0] sm:$0xff]  ;;  %v386_v30 = vld [vmem:[#allocation7 + $0x1d0] sm:$0xff]  ;;  %v908_v31 = vpack.c.bf16 %v391_v24, %v387_v23  ;;  %v264_v33 = vld [vmem:[#allocation5 + $0x8] sm:$0xff] }
  0x85   : > { %867 = vmatpush1.bf16.msra.mxu0 %v866_v0  ;;  %v388_v29 = vld [vmem:[#allocation7 + $0x1e0] sm:$0xff]  ;;  %v390_v32 = vld [vmem:[#allocation7 + $0x1f0] sm:$0xff]  ;;  %v268_v34 = vld [vmem:[#allocation5 + $0x28] sm:$0xff] }
  0x86   : > { %899 = vmatpush1.bf16.msra.mxu1 %v898_v1  ;;  %869 = vmatprep.subr.bf16.mxu0 %v868_v2  ;;  %v266_v35 = vld [vmem:[#allocation5 + $0x18] sm:$0xff]  ;;  %v878_v37 = vpack.c.bf16 %v388_v29, %v384_v28  ;;  %v910_v38 = vpack.c.bf16 %v390_v32, %v386_v30  ;;  %v912_v39 = vpack.c.bf16 %v268_v34, %v264_v33  ;;  %v263_v40 = vld [vmem:[#allocation5] sm:$0xff]  ;;  %v265_v42 = vld [vmem:[#allocation5 + $0x10] sm:$0xff] }
  0x87   : > { %901 = vmatprep.subr.bf16.mxu1 %v900_v6  ;;  %v270_v36 = vld [vmem:[#allocation5 + $0x38] sm:$0xff]  ;;  %v267_v41 = vld [vmem:[#allocation5 + $0x20] sm:$0xff]  ;;  %v269_v44 = vld [vmem:[#allocation5 + $0x30] sm:$0xff] }
  0x88   : > { %v944_v43 = vpack.c.bf16 %v270_v36, %v266_v35  ;;  %v272_v45 = vld [vmem:[#allocation5 + $0x48] sm:$0xff]  ;;  %v274_v47 = vld [vmem:[#allocation5 + $0x58] sm:$0xff]  ;;  %v327_v49 = vld [vmem:[#allocation8] sm:$0xff]  ;;  %v914_v50 = vpack.c.bf16 %v267_v41, %v263_v40  ;;  %v946_v51 = vpack.c.bf16 %v269_v44, %v265_v42 }
  0x89   : > { %871 = vmatpush1.bf16.msra.mxu0 %v870_v13  ;;  %v276_v46 = vld [vmem:[#allocation5 + $0x68] sm:$0xff]  ;;  %v278_v48 = vld [vmem:[#allocation5 + $0x78] sm:$0xff]  ;;  %v271_v53 = vld [vmem:[#allocation5 + $0x40] sm:$0xff] }
  0x8a   : > { %903 = vmatpush1.bf16.msra.mxu1 %v902_v14  ;;  %873 = vmatprep.subr.bf16.mxu0 %v872_v15  ;;  %v916_v52 = vpack.c.bf16 %v276_v46, %v272_v45  ;;  %v275_v54 = vld [vmem:[#allocation5 + $0x60] sm:$0xff]  ;;  %v273_v55 = vld [vmem:[#allocation5 + $0x50] sm:$0xff]  ;;  %v948_v56 = vpack.c.bf16 %v278_v48, %v274_v47  ;;  %v280_v58 = vld [vmem:[#allocation5 + $0x88] sm:$0xff] }
  0x8b   : > { %905 = vmatprep.subr.bf16.mxu1 %v904_v19  ;;  %v277_v57 = vld [vmem:[#allocation5 + $0x70] sm:$0xff]  ;;  %v284_v59 = vld [vmem:[#allocation5 + $0xa8] sm:$0xff]  ;;  %v282_v60 = vld [vmem:[#allocation5 + $0x98] sm:$0xff]  ;;  %v918_v62 = vpack.c.bf16 %v275_v54, %v271_v53 }
  0x8c   : > { %v286_v61 = vld [vmem:[#allocation5 + $0xb8] sm:$0xff]  ;;  %v950_v63 = vpack.c.bf16 %v277_v57, %v273_v55  ;;  %v920_v0 = vpack.c.bf16 %v284_v59, %v280_v58  ;;  %v279_v1 = vld [vmem:[#allocation5 + $0x80] sm:$0xff]  ;;  %v281_v3 = vld [vmem:[#allocation5 + $0x90] sm:$0xff] }
  0x8d   : > { %875 = vmatpush1.bf16.msra.mxu0 %v874_v25  ;;  %v283_v2 = vld [vmem:[#allocation5 + $0xa0] sm:$0xff]  ;;  %v952_v4 = vpack.c.bf16 %v286_v61, %v282_v60  ;;  %v285_v5 = vld [vmem:[#allocation5 + $0xb0] sm:$0xff]  ;;  %v288_v6 = vld [vmem:[#allocation5 + $0xc8] sm:$0xff] }
  0x8e   : > { %907 = vmatpush1.bf16.msra.mxu1 %v906_v26  ;;  %877 = vmatprep.subr.bf16.mxu0 %v876_v27  ;;  %v292_v7 = vld [vmem:[#allocation5 + $0xe8] sm:$0xff]  ;;  %v290_v9 = vld [vmem:[#allocation5 + $0xd8] sm:$0xff]  ;;  %v922_v11 = vpack.c.bf16 %v283_v2, %v279_v1  ;;  %v954_v12 = vpack.c.bf16 %v285_v5, %v281_v3  ;;  %v287_v14 = vld [vmem:[#allocation5 + $0xc0] sm:$0xff]  ;;  %v678_v5 = vlaneseq }
  0x8f   : > { %909 = vmatprep.subr.bf16.mxu1 %v908_v31  ;;  %v294_v10 = vld [vmem:[#allocation5 + $0xf8] sm:$0xff]  ;;  %v924_v13 = vpack.c.bf16 %v292_v7, %v288_v6  ;;  %v291_v15 = vld [vmem:[#allocation5 + $0xe0] sm:$0xff]  ;;  %v289_v16 = vld [vmem:[#allocation5 + $0xd0] sm:$0xff] }
  0x90   : > { %v956_v17 = vpack.c.bf16 %v294_v10, %v290_v9  ;;  %v293_v18 = vld [vmem:[#allocation5 + $0xf0] sm:$0xff]  ;;  %v296_v19 = vld [vmem:[#allocation5 + $0x108] sm:$0xff]  ;;  %v298_v21 = vld [vmem:[#allocation5 + $0x118] sm:$0xff]  ;;  %v926_v23 = vpack.c.bf16 %v291_v15, %v287_v14  ;;  %v679_v6 = vshrl.u32 %v678_v5, 7 }
  0x91   : > { %879 = vmatpush1.bf16.msra.mxu0 %v878_v37  ;;  %v300_v20 = vld [vmem:[#allocation5 + $0x128] sm:$0xff]  ;;  %v302_v22 = vld [vmem:[#allocation5 + $0x138] sm:$0xff]  ;;  %v295_v25 = vld [vmem:[#allocation5 + $0x100] sm:$0xff] }
  0x92   : > { %911 = vmatpush1.bf16.msra.mxu1 %v910_v38  ;;  %913 = vmatprep.subr.bf16.mxu0 %v912_v39  ;;  %v928_v24 = vpack.c.bf16 %v300_v20, %v296_v19  ;;  %v299_v26 = vld [vmem:[#allocation5 + $0x120] sm:$0xff]  ;;  %v297_v27 = vld [vmem:[#allocation5 + $0x110] sm:$0xff]  ;;  %v960_v28 = vpack.c.bf16 %v302_v22, %v298_v21  ;;  %v304_v30 = vld [vmem:[#allocation5 + $0x148] sm:$0xff]  ;;  %v680_v7 = vsub.s32 0, %v679_v6  ;;  %v684_v10 = vsub.s32 1, %v679_v6 }
  0x93   : > { %945 = vmatprep.subr.bf16.mxu1 %v944_v43  ;;  %v301_v29 = vld [vmem:[#allocation5 + $0x130] sm:$0xff]  ;;  %v308_v31 = vld [vmem:[#allocation5 + $0x168] sm:$0xff]  ;;  %v306_v32 = vld [vmem:[#allocation5 + $0x158] sm:$0xff]  ;;  %v930_v34 = vpack.c.bf16 %v299_v26, %v295_v25  ;;  %v692_v14 = vsub.s32 3, %v679_v6 }
  0x94   : > { %457 = vmatmul.mubr.f32.vlgmr.msra.gmra.mrb[0].mxu0 %v327_v49  ;;  %v310_v33 = vld [vmem:[#allocation5 + $0x178] sm:$0xff]  ;;  %v962_v35 = vpack.c.bf16 %v301_v29, %v297_v27  ;;  %v932_v36 = vpack.c.bf16 %v308_v31, %v304_v30  ;;  %v303_v37 = vld [vmem:[#allocation5 + $0x140] sm:$0xff]  ;;  %v305_v39 = vld [vmem:[#allocation5 + $0x150] sm:$0xff] }
  0x95   : > { %528 = vmatmul.mubr.f32.vlgmr.msra.gmra.mrb[0].mxu1 %v327_v49  ;;  %915 = vmatpush1.bf16.msra.mxu0 %v914_v50  ;;  %v307_v38 = vld [vmem:[#allocation5 + $0x160] sm:$0xff]  ;;  %v964_v40 = vpack.c.bf16 %v310_v33, %v306_v32  ;;  %v309_v41 = vld [vmem:[#allocation5 + $0x170] sm:$0xff]  ;;  %v312_v42 = vld [vmem:[#allocation5 + $0x188] sm:$0xff] }
  0x96   : > { %947 = vmatpush1.bf16.msra.mxu1 %v946_v51  ;;  %917 = vmatprep.subr.bf16.mxu0 %v916_v52  ;;  %v316_v43 = vld [vmem:[#allocation5 + $0x1a8] sm:$0xff]  ;;  %v314_v44 = vld [vmem:[#allocation5 + $0x198] sm:$0xff]  ;;  %v934_v46 = vpack.c.bf16 %v307_v38, %v303_v37  ;;  %v966_v47 = vpack.c.bf16 %v309_v41, %v305_v39  ;;  %v311_v49 = vld [vmem:[#allocation5 + $0x180] sm:$0xff] }
  0x97   : > { %949 = vmatprep.subr.bf16.mxu1 %v948_v56  ;;  %598 = vmatprep.mubr.f32.mxu0 %v1266_v8  ;;  %v318_v45 = vld [vmem:[#allocation5 + $0x1b8] sm:$0xff]  ;;  %v936_v48 = vpack.c.bf16 %v316_v43, %v312_v42  ;;  %v315_v50 = vld [vmem:[#allocation5 + $0x1a0] sm:$0xff]  ;;  %v313_v51 = vld [vmem:[#allocation5 + $0x190] sm:$0xff] }
  0x98   : > { %669 = vmatprep.mubr.f32.mxu1 %v1266_v8  ;;  %v958_v8 = vpack.c.bf16 %v293_v18, %v289_v16  ;;  %v968_v52 = vpack.c.bf16 %v318_v45, %v314_v44  ;;  %v317_v53 = vld [vmem:[#allocation5 + $0x1b0] sm:$0xff]  ;;  %v320_v54 = vld [vmem:[#allocation5 + $0x1c8] sm:$0xff]  ;;  %v322_v56 = vld [vmem:[#allocation5 + $0x1d8] sm:$0xff]  ;;  %v938_v58 = vpack.c.bf16 %v315_v50, %v311_v49 }
  0x99   : > { %919 = vmatpush1.bf16.msra.mxu0 %v918_v62  ;;  %v324_v55 = vld [vmem:[#allocation5 + $0x1e8] sm:$0xff]  ;;  %v326_v57 = vld [vmem:[#allocation5 + $0x1f8] sm:$0xff]  ;;  %v970_v59 = vpack.c.bf16 %v317_v53, %v313_v51  ;;  %v319_v61 = vld [vmem:[#allocation5 + $0x1c0] sm:$0xff] }
  0x9a   : > { %951 = vmatpush1.bf16.msra.mxu1 %v950_v63  ;;  %921 = vmatprep.subr.bf16.mxu0 %v920_v0  ;;  %v940_v60 = vpack.c.bf16 %v324_v55, %v320_v54  ;;  %v323_v62 = vld [vmem:[#allocation5 + $0x1e0] sm:$0xff]  ;;  %v972_v63 = vpack.c.bf16 %v326_v57, %v322_v56  ;;  %v321_v0 = vld [vmem:[#allocation5 + $0x1d0] sm:$0xff]  ;;  %v721_v33 = vld [vmem:[#allocation9] sm:$0xff] }
  0x9b   : > { %953 = vmatprep.subr.bf16.mxu1 %v952_v4  ;;  %v325_v1 = vld [vmem:[#allocation5 + $0x1f0] sm:$0xff]  ;;  %v942_v2 = vpack.c.bf16 %v323_v62, %v319_v61 }
  0x9c   : > { %v974_v3 = vpack.c.bf16 %v325_v1, %v321_v0  ;;  %v262_v4 = vld [vmem:[%s226_s29] sm:$0xff] }
  0x9d   : > { %923 = vmatpush1.bf16.msra.mxu0 %v922_v11  ;;  %v676_v9 = vld [vmem:[%s1529_s3] sm:$0xf] }
  0x9e   : > { %955 = vmatpush1.bf16.msra.mxu1 %v954_v12  ;;  %925 = vmatprep.subr.bf16.mxu0 %v924_v13  ;;  %v681_v11 = vrot.slane %v676_v9, %v680_v7  ;;  %v685_v12 = vrot.slane %v676_v9, %v684_v10  ;;  %v693_v22 = vrot.slane %v676_v9, %v692_v14 }
  0x9f   : > { %957 = vmatprep.subr.bf16.mxu1 %v956_v17 }
  0xa1   : > { %927 = vmatpush1.bf16.msra.mxu0 %v926_v23  ;;  %v688_v23 = vsub.s32 2, %v679_v6 }
  0xa2   : > { %959 = vmatpush1.bf16.msra.mxu1 %v958_v8  ;;  %929 = vmatprep.subr.bf16.mxu0 %v928_v24 }
  0xa3   : > { %961 = vmatprep.subr.bf16.mxu1 %v960_v28  ;;  %v689_v24 = vrot.slane %v676_v9, %v688_v23 }
  0xa5   : > { %931 = vmatpush1.bf16.msra.mxu0 %v930_v34 }
  0xa6   : > { %963 = vmatpush1.bf16.msra.mxu1 %v962_v35  ;;  %933 = vmatprep.subr.bf16.mxu0 %v932_v36 }
  0xa7   : > { %965 = vmatprep.subr.bf16.mxu1 %v964_v40 }
  0xa9   : > { %935 = vmatpush1.bf16.msra.mxu0 %v934_v46 }
  0xaa   : > { %967 = vmatpush1.bf16.msra.mxu1 %v966_v47  ;;  %937 = vmatprep.subr.bf16.mxu0 %v936_v48 }
  0xab   : > { %969 = vmatprep.subr.bf16.mxu1 %v968_v52 }
  0xad   : > { %939 = vmatpush1.bf16.msra.mxu0 %v938_v58 }
  0xae   : > { %971 = vmatpush1.bf16.msra.mxu1 %v970_v59  ;;  %941 = vmatprep.subr.bf16.mxu0 %v940_v60 }
  0xaf   : > { %973 = vmatprep.subr.bf16.mxu1 %v972_v63 }
  0xb1   : > { %943 = vmatpush1.bf16.msra.mxu0 %v942_v2 }
  0xb2   : > { %975 = vmatpush1.bf16.msra.mxu1 %v974_v3 }
  0xb4   : > { %599 = vmatmul.mubr.f32.vlgmr.msra.gmra.mrb[0].mxu0 %v262_v4 }
  0xb5   : > { %670 = vmatmul.mubr.f32.vlgmr.msra.gmra.mrb[0].mxu1 %v262_v4 }
 0x187   : > { %v600_v13 = vpop.f32.mrb[0].mxu0 }
 0x188   : > { %v698_v15 = vadd.f32 %v681_v11, %v600_v13  ;;  %v671_v16 = vpop.f32.mrb[0].mxu1  ;;  %v602_v17 = vpop.f32.mrb[1].mxu0 }
 0x189   : > { %v699_v18 = vadd.f32 %v685_v12, %v602_v17  ;;  %v673_v19 = vpop.f32.mrb[1].mxu1  ;;  %v700_v26 = vadd.f32 %v689_v24, %v671_v16 }
 0x18a   : > { %v839_v20 = vmul.f32 -1.442695, %v698_v15  ;;  %v701_v8 = vadd.f32 %v693_v22, %v673_v19 }
 0x18b   : > { %v840_v21 = vmul.f32 -1.442695, %v699_v18 }
 0x18c   : > { %1058 = vpow2.f32 %v839_v20  ;;  %v841_v25 = vmul.f32 -1.442695, %v701_v8 }
 0x18d   : > { %1060 = vpow2.f32 %v840_v21 }
 0x18e   : > { %1062 = vpow2.f32 %v841_v25 }
 0x18f   : > { %1064 = vtanh.f32 %v700_v26 }
 0x196   : > { %v1059_v27 = vpop.eup %1058 }
 0x197   : > { %v1061_v28 = vpop.eup %1060  ;;  %v705_v29 = vadd.f32 1.0, %v1059_v27 }
 0x198   : > { %v711_v30 = vadd.f32 1.0, %v1061_v28  ;;  %v1063_v31 = vpop.eup %1062 }
 0x199   : > { %1066 = vrcp.f32 %v705_v29  ;;  %v1065_v32 = vpop.eup %1064  ;;  %v718_v37 = vadd.f32 1.0, %v1063_v31 }
 0x19a   : > { %1068 = vrcp.f32 %v711_v30 }
 0x19b   : > { %1070 = vrcp.f32 %v718_v37 }
 0x1a3   : > { %v1067_v34 = vpop.eup %1066 }
 0x1a4   : > { %v1069_v35 = vpop.eup %1068  ;;  %v723_v36 = vmul.f32 %v1067_v34, %v1065_v32 }
 0x1a5   : > { %v722_v38 = vmul.f32 %v1069_v35, %v721_v33 }
 0x1a7   : > { %v724_v39 = vadd.f32 %v723_v36, %v722_v38 }
 0x1a9   : > { %1072 = vtanh.f32 %v724_v39  ;;  %728 = vst [vmem:[#allocation9] sm:$0xff] %v724_v39 }
 0x1aa   : > { %1173 = shalt.err (!%p1170_p0)
}
 0x1ab   : > { %s1174_s6 = scalar_lea.hbm %s1531_s5, 128 }
 0x1ac   : > { %p1175_p2 = scmp.ne.s32.totalorder %s1531_s5, %s1174_s6  ;;  %p1180_p3 = scmp.lt.u32.totalorder %s1174_s6, %s1531_s5 }
 0x1ae   : > { %p1176_p13 = pnand %p1175_p2, %p1014_p10 }
 0x1b0   : > { %p1177_p11 = pneg %p1176_p13 }
 0x1b2   : > { %p1182_p8 = pnand %p1180_p3, %p1177_p11 }
 0x1b4   : > { %1185 = shalt.err (!%p1182_p8)
}
 0x1b5   : > { %993 = dma.vmem_to_hbm [thread:$0]  (%p1014_p10), %s748_s13, 128, %s1531_s5, [#allocation10]   ;;  %v1071_v40 = vpop.eup %1070 }
 0x1b6   : > { %s1268_s12 = smov [#allocation8]   ;;  %v1073_v41 = vpop.eup %1072 }
 0x1b7   : > { %s736_s16 = sshll.u32 %s1268_s12, 4  ;;  %v726_v42 = vmul.f32 %v1073_v41, %v1071_v40  ;;  %s737_s16 = int_to_ptr.vmem [resolvable:$true] %s736_s16 }
 0x1b8   : > { %s1186_s17 = scalar_lea.vmem %s737_s16, 128  ;;  %p1193_p4 = scmp.lt.s32.totalorder %s737_s16, %s737_s16 }
 0x1b9   : > { %727 = vst [vmem:[#allocation8] sm:$0xff] %v726_v42  ;;  %p1187_p7 = scmp.ne.s32.totalorder %s737_s16, %s1186_s17  ;;  %p1194_p5 = scmp.lt.s32.totalorder %s1186_s17, %s1186_s17 }
 0x1bb   : > { %p1188_p9 = pnand %p1187_p7, %p1014_p10  ;;  %p1195_p6 = por %p1194_p5, %p1193_p4 }
 0x1bd   : > { %p1189_p1 = pneg %p1188_p9 }
 0x1bf   : > { %p1196_p12 = pnand %p1195_p6, %p1189_p1 }
 0x1c1   : > { %1199 = shalt.err (!%p1196_p12)
}
 0x1c2   : > { %s1200_s29 = scalar_lea.hbm %s1530_s4, 128 }
 0x1c3   : > { %p1201_p0 = scmp.ne.s32.totalorder %s1530_s4, %s1200_s29  ;;  %p1206_p11 = scmp.lt.u32.totalorder %s1200_s29, %s1530_s4 }
 0x1c5   : > { %p1202_p2 = pnand %p1201_p0, %p1014_p10 }
 0x1c7   : > { %p1203_p13 = pneg %p1202_p2 }
 0x1c9   : > { %p1208_p3 = pnand %p1206_p11, %p1203_p13 }
 0x1cb   : > { %1211 = shalt.err (!%p1208_p3)
}
 0x1cc   : > { %991 = dma.vmem_to_hbm [thread:$0]  (%p1014_p10), %s737_s16, 128, %s1530_s4, [#allocation4]  }
 0x1cd   : > { %1237 = dma.done.wait (%p1014_p10), [#allocation4], 128  }
 0x1ce   : > { %1239 = vsyncadd (%p1014_p10), [#allocation4], 4294967168 }
 0x1cf   : > { %1241 = dma.done.wait (%p1014_p10), [#allocation10], 128  }
 0x1d0   : > { %1243 = vsyncadd (%p1014_p10), [#allocation10], 4294967168 }
 0x1d1 PF: > { %p19_p8 = scmp.ge.s32.totalorder %s1393_s10, 9   ;;  %s1544_s18 = smov %s1250_s19 }
 0x1d2   : > { %s1545_s19 = smov %s1254_s20  ;;  %s1546_s20 = smov %s1404_s15 }
 0x1d3   : > { %s1547_s21 = smov %s1393_s10  ;;  %21 = sbr.rel (!%p19_p8) target bundleno = 6 (0x6), region = 93 }
 0x1da   :  { %764 = vsyncpa [#allocation3], 1 }
 0x1db   :  { %766 = vsyncpa [#allocation3 + $0x1], 1 }
 0x1dc   :  { %767 = vsyncpa [#allocation6], 1 }
 0x1dd   :  { %768 = vsyncpa [#allocation4], 1 }
 0x1de   :  { %770 = vsyncpa [#allocation4 + $0x1], 1 }
 0x1df   :  { %771 = vsyncpa [#allocation10], 1 }

</bundles_post_ra>
